<compile_context>
chip_gen: v7x
topology: tpu7x:2x2x1
jax: 0.10.0
libtpu: 0.0.40
codegen_flags: <defaults>
</compile_context>

<pallas_src>
import jax
import jax.numpy as jnp
from jax.experimental import pallas as pl
from jax.experimental.pallas import tpu as pltpu


# --------------------------------------------------------------------------
# Fused LinearSelfAttention kernel: one batch element per grid step.
# All tensors live in the transposed (C, H*W) layout (channels on sublanes,
# flattened spatial on lanes -> lane-dense, HW % 128 == 0).
# --------------------------------------------------------------------------
def _lsa_kernel(x_ref, wkvq_ref, bkvq_ref, wout_ref, bout_ref,
                seg_ref, segt_ref, o_ref):
    C = wout_ref.shape[0]

    x = x_ref[0].astype(jnp.float32)                            # (C, HW)

    # qkv 1x1 conv as a single MXU matmul.  Weight rows are pre-ordered
    # [key | value | query] so the row splits below are 8-sublane aligned
    # (no lane repacking / relayout).
    kvq = jnp.dot(wkvq_ref[...].astype(jnp.float32), x,
                  preferred_element_type=jnp.float32) + bkvq_ref[...]   # (2C+1, HW)
    k = kvq[0:C, :]                                             # key   (C, HW)
    v = kvq[C:2 * C, :]                                         # value (C, HW)
    q = kvq[2 * C:2 * C + 1, :]                                 # query (1, HW)

    # softmax(query, dim=-1) within each spatial row h (groups of W lanes).
    # Shifting by the global max is mathematically identical (a constant per
    # group) and keeps exp() in range; the per-group normalization happens
    # through the segment-matrix sums below -> no in-kernel reshapes needed.
    q = q - jnp.max(q, axis=-1, keepdims=True)
    e = jnp.exp(q)                                              # (1, HW)

    seg = seg_ref[...]                                          # (HW, H) one-hot hw -> h
    segt = segt_ref[...]                                        # (H, HW)

    num = jnp.dot(k * e, seg, preferred_element_type=jnp.float32)    # (C, H) sum_w key*exp(q)
    den = jnp.dot(e, seg, preferred_element_type=jnp.float32)        # (1, H) sum_w exp(q)
    ctx = num * pl.reciprocal(den, approx=True)                 # (C, H) == context_vector
    ctx_hw = jnp.dot(ctx, segt, preferred_element_type=jnp.float32)  # broadcast back over W

    out = jnp.maximum(v, 0.0) * ctx_hw                          # relu(value) * context
    out = jnp.dot(wout_ref[...].astype(jnp.float32), out,       # out_proj 1x1 conv
                  preferred_element_type=jnp.float32) + bout_ref[...]

    o_ref[0] = out.astype(o_ref.dtype)                          # lane-dense (C, HW) store


# --------------------------------------------------------------------------
# Wrapper: layout plumbing + the single pallas_call.
# --------------------------------------------------------------------------
def linear_self_attention(x, params):
    """x: (B, d1, d2, embed_dim), exactly as the PyTorch forward receives it."""
    B, d1, d2, C = x.shape
    H, W = d2, d1                       # after x.permute(0, 3, 2, 1): (B, C, H, W)
    HW = H * W

    # permute(0,3,2,1) + flatten spatial (hw = h*W + w) -> (B, C, HW).
    xf = jnp.transpose(x, (0, 3, 2, 1)).reshape(B, C, HW)

    # qkv_proj conv weight layout (out, in) = (1+2C, C): row 0 = query,
    # rows 1..C = key, rows C+1..2C = value (torch .split([1, C, C], dim=1)).
    # Reorder to [key | value | query] so in-kernel row slices are tile-aligned.
    wq, bq = params['w_qkv'], params['b_qkv']
    w_kvq = jnp.concatenate([wq[1:1 + C], wq[1 + C:1 + 2 * C], wq[0:1]], axis=0)
    b_kvq = jnp.concatenate([bq[1:1 + C], bq[1 + C:1 + 2 * C], bq[0:1]],
                            axis=0).reshape(2 * C + 1, 1)
    w_out = params['w_out']                                     # (C_out, C_in)
    b_out = params['b_out'].reshape(C, 1)

    # Constant one-hot segment matrices: turn the per-row (over W) softmax sum
    # and its broadcast back over W into plain MXU matmuls.
    gid = jnp.arange(HW, dtype=jnp.int32) // W
    seg = (gid[:, None] == jnp.arange(H, dtype=jnp.int32)[None, :]).astype(jnp.float32)
    segt = seg.T

    out = pl.pallas_call(
        _lsa_kernel,
        out_shape=jax.ShapeDtypeStruct((B, C, HW), x.dtype),
        grid=(B,),
        in_specs=[
            pl.BlockSpec((1, C, HW), lambda b: (b, 0, 0)),        # activations
            pl.BlockSpec((2 * C + 1, C), lambda b: (0, 0)),       # fused qkv weight
            pl.BlockSpec((2 * C + 1, 1), lambda b: (0, 0)),       # fused qkv bias
            pl.BlockSpec((C, C), lambda b: (0, 0)),               # out_proj weight
            pl.BlockSpec((C, 1), lambda b: (0, 0)),               # out_proj bias
            pl.BlockSpec((HW, H), lambda b: (0, 0)),              # segment one-hot
            pl.BlockSpec((H, HW), lambda b: (0, 0)),              # segment one-hot^T
        ],
        out_specs=pl.BlockSpec((1, C, HW), lambda b: (b, 0, 0)),
        compiler_params=pltpu.CompilerParams(
            dimension_semantics=("parallel",)),                   # v7x: 2 TCs on batch
    )(xf, w_kvq, b_kvq, w_out, b_out, seg, segt)

    # (B, C, HW) is already NCHW-contiguous -> free reshape to (B, C, H, W).
    return out.reshape(B, C, H, W)


# --------------------------------------------------------------------------
# Pure-JAX reference (mirrors the PyTorch forward) for a correctness check.
# --------------------------------------------------------------------------
def _reference(x, params):
    B, d1, d2, C = x.shape
    xp = jnp.transpose(x, (0, 3, 2, 1)).astype(jnp.float32)      # (B, C, H, W)
    qkv = (jnp.einsum('oc,bchw->bohw', params['w_qkv'], xp)
           + params['b_qkv'][None, :, None, None])
    query, key, value = qkv[:, 0:1], qkv[:, 1:1 + C], qkv[:, 1 + C:1 + 2 * C]
    scores = jax.nn.softmax(query, axis=-1)
    ctx = jnp.sum(key * scores, axis=-1, keepdims=True)
    out = jax.nn.relu(value) * ctx
    out = (jnp.einsum('oc,bchw->bohw', params['w_out'], out)
           + params['b_out'][None, :, None, None])
    return out


def make_params(key, embed_dim):
    k1, k2, k3, k4 = jax.random.split(key, 4)
    nrm = lambda k, s: 0.1 * jax.random.normal(k, s, jnp.float32)
    return {
        'w_qkv': nrm(k1, (1 + 2 * embed_dim, embed_dim)),  # Conv2d(C,1+2C,1) weight (k=1 squeezed)
        'b_qkv': nrm(k2, (1 + 2 * embed_dim,)),
        'w_out': nrm(k3, (embed_dim, embed_dim)),          # Conv2d(C,C,1) weight (k=1 squeezed)
        'b_out': nrm(k4, (embed_dim,)),
    }


if __name__ == "__main__":
    # LinearSelfAttention(embed_dim=32); input (B, d1, d2, embed_dim) = (2, 16, 16, 32)
    B, d1, d2, C = 2, 16, 16, 32
    key = jax.random.PRNGKey(0)
    kx, kp = jax.random.split(key)
    x = jax.random.normal(kx, (B, d1, d2, C), jnp.float32)
    params = make_params(kp, C)

    fwd = jax.jit(linear_self_attention)
    out = jax.block_until_ready(fwd(x, params))

    assert out.shape == (B, C, d2, d1), out.shape            # matches torch (B, C, H, W)
    assert bool(jnp.all(jnp.isfinite(out)))

    ref = _reference(x, params)
    max_err = float(jnp.max(jnp.abs(out - ref)))
    assert max_err < 5e-2, f"max abs err vs reference: {max_err}"

    print("KERNEL_OK")
</pallas_src>

<mosaic_0001>
module attributes {stable_mosaic.version = 11 : i64} {
  func.func @_lsa_kernel(%arg0: i32, %arg1: memref<1x32x256xf32, #tpu.memory_space<vmem>>, %arg2: memref<65x32xf32, #tpu.memory_space<vmem>>, %arg3: memref<65x1xf32, #tpu.memory_space<vmem>>, %arg4: memref<32x32xf32, #tpu.memory_space<vmem>>, %arg5: memref<32x1xf32, #tpu.memory_space<vmem>>, %arg6: memref<256x16xf32, #tpu.memory_space<vmem>>, %arg7: memref<16x256xf32, #tpu.memory_space<vmem>>, %arg8: memref<1x32x256xf32, #tpu.memory_space<vmem>>) attributes {dimension_semantics = [#tpu.dimension_semantics<parallel>], iteration_bounds = array<i64: 2>, scalar_prefetch = 0 : i64, scratch_operands = 0 : i64, tpu.core_type = #tpu.core_type<tc>, window_params = [{transform_indices = @transform_0, window_bounds = array<i64: 1, 32, 256>}, {pipeline_mode = #tpu.pipeline_mode<synchronous>, transform_indices = @transform_1, window_bounds = array<i64: 65, 32>}, {pipeline_mode = #tpu.pipeline_mode<synchronous>, transform_indices = @transform_2, window_bounds = array<i64: 65, 1>}, {pipeline_mode = #tpu.pipeline_mode<synchronous>, transform_indices = @transform_3, window_bounds = array<i64: 32, 32>}, {pipeline_mode = #tpu.pipeline_mode<synchronous>, transform_indices = @transform_4, window_bounds = array<i64: 32, 1>}, {pipeline_mode = #tpu.pipeline_mode<synchronous>, transform_indices = @transform_5, window_bounds = array<i64: 256, 16>}, {pipeline_mode = #tpu.pipeline_mode<synchronous>, transform_indices = @transform_6, window_bounds = array<i64: 16, 256>}, {transform_indices = @transform_7, window_bounds = array<i64: 1, 32, 256>}]} {
    %c0 = arith.constant 0 : index
    %c0_0 = arith.constant 0 : index
    %c0_1 = arith.constant 0 : index
    %0 = vector.load %arg1[%c0, %c0_0, %c0_1] : memref<1x32x256xf32, #tpu.memory_space<vmem>>, vector<1x32x256xf32>
    %1 = vector.shape_cast %0 : vector<1x32x256xf32> to vector<32x256xf32>
    %c0_2 = arith.constant 0 : index
    %c0_3 = arith.constant 0 : index
    %2 = vector.load %arg2[%c0_2, %c0_3] : memref<65x32xf32, #tpu.memory_space<vmem>>, vector<65x32xf32>
    %cst = arith.constant dense<0.000000e+00> : vector<65x256xf32>
    %3 = tpu.matmul %2, %1, %cst {dimension_numbers = #tpu.dot_dimension_numbers<[1], [0], [0], [1], [0, 0, 1, 1], [], []>} : vector<65x32xf32>, vector<32x256xf32>, vector<65x256xf32> -> vector<65x256xf32>
    %c0_4 = arith.constant 0 : index
    %c0_5 = arith.constant 0 : index
    %4 = vector.load %arg3[%c0_4, %c0_5] : memref<65x1xf32, #tpu.memory_space<vmem>>, vector<65x1xf32>
    %5 = vector.broadcast %4 : vector<65x1xf32> to vector<65x256xf32>
    %6 = arith.addf %3, %5 : vector<65x256xf32>
    %7 = vector.extract_strided_slice %6 {offsets = [0, 0], sizes = [32, 256], strides = [1, 1]} : vector<65x256xf32> to vector<32x256xf32>
    %8 = vector.extract_strided_slice %6 {offsets = [32, 0], sizes = [32, 256], strides = [1, 1]} : vector<65x256xf32> to vector<32x256xf32>
    %9 = vector.extract_strided_slice %6 {offsets = [64, 0], sizes = [1, 256], strides = [1, 1]} : vector<65x256xf32> to vector<1x256xf32>
    %cst_6 = arith.constant dense<0xFF800000> : vector<1xf32>
    %10 = vector.multi_reduction <maximumf>, %9, %cst_6 [1] : vector<1x256xf32> to vector<1xf32>
    %11 = vector.shape_cast %10 : vector<1xf32> to vector<1x1xf32>
    %12 = vector.broadcast %11 : vector<1x1xf32> to vector<1x256xf32>
    %13 = arith.subf %9, %12 : vector<1x256xf32>
    %14 = math.exp %13 : vector<1x256xf32>
    %c0_7 = arith.constant 0 : index
    %c0_8 = arith.constant 0 : index
    %15 = vector.load %arg6[%c0_7, %c0_8] : memref<256x16xf32, #tpu.memory_space<vmem>>, vector<256x16xf32>
    %c0_9 = arith.constant 0 : index
    %c0_10 = arith.constant 0 : index
    %16 = vector.load %arg7[%c0_9, %c0_10] : memref<16x256xf32, #tpu.memory_space<vmem>>, vector<16x256xf32>
    %17 = vector.broadcast %14 : vector<1x256xf32> to vector<32x256xf32>
    %18 = arith.mulf %7, %17 : vector<32x256xf32>
    %cst_11 = arith.constant dense<0.000000e+00> : vector<32x16xf32>
    %19 = tpu.matmul %18, %15, %cst_11 {dimension_numbers = #tpu.dot_dimension_numbers<[1], [0], [0], [1], [0, 0, 1, 1], [], []>} : vector<32x256xf32>, vector<256x16xf32>, vector<32x16xf32> -> vector<32x16xf32>
    %cst_12 = arith.constant dense<0.000000e+00> : vector<1x16xf32>
    %20 = tpu.matmul %14, %15, %cst_12 {dimension_numbers = #tpu.dot_dimension_numbers<[1], [0], [0], [1], [0, 0, 1, 1], [], []>} : vector<1x256xf32>, vector<256x16xf32>, vector<1x16xf32> -> vector<1x16xf32>
    %21 = tpu.reciprocal %20 {approx = true} : vector<1x16xf32> -> vector<1x16xf32>
    %22 = vector.broadcast %21 : vector<1x16xf32> to vector<32x16xf32>
    %23 = arith.mulf %19, %22 : vector<32x16xf32>
    %cst_13 = arith.constant dense<0.000000e+00> : vector<32x256xf32>
    %24 = tpu.matmul %23, %16, %cst_13 {dimension_numbers = #tpu.dot_dimension_numbers<[1], [0], [0], [1], [0, 0, 1, 1], [], []>} : vector<32x16xf32>, vector<16x256xf32>, vector<32x256xf32> -> vector<32x256xf32>
    %cst_14 = arith.constant 0.000000e+00 : f32
    %25 = vector.broadcast %cst_14 : f32 to vector<32x256xf32>
    %26 = arith.maximumf %8, %25 : vector<32x256xf32>
    %27 = arith.mulf %26, %24 : vector<32x256xf32>
    %c0_15 = arith.constant 0 : index
    %c0_16 = arith.constant 0 : index
    %28 = vector.load %arg4[%c0_15, %c0_16] : memref<32x32xf32, #tpu.memory_space<vmem>>, vector<32x32xf32>
    %cst_17 = arith.constant dense<0.000000e+00> : vector<32x256xf32>
    %29 = tpu.matmul %28, %27, %cst_17 {dimension_numbers = #tpu.dot_dimension_numbers<[1], [0], [0], [1], [0, 0, 1, 1], [], []>} : vector<32x32xf32>, vector<32x256xf32>, vector<32x256xf32> -> vector<32x256xf32>
    %c0_18 = arith.constant 0 : index
    %c0_19 = arith.constant 0 : index
    %30 = vector.load %arg5[%c0_18, %c0_19] : memref<32x1xf32, #tpu.memory_space<vmem>>, vector<32x1xf32>
    %31 = vector.broadcast %30 : vector<32x1xf32> to vector<32x256xf32>
    %32 = arith.addf %29, %31 : vector<32x256xf32>
    %c0_20 = arith.constant 0 : index
    %c0_21 = arith.constant 0 : index
    %c0_22 = arith.constant 0 : index
    %33 = vector.load %arg8[%c0_20, %c0_21, %c0_22] : memref<1x32x256xf32, #tpu.memory_space<vmem>>, vector<1x32x256xf32>
    %34 = vector.shape_cast %33 : vector<1x32x256xf32> to vector<32x256xf32>
    %35 = vector.shape_cast %32 : vector<32x256xf32> to vector<1x32x256xf32>
    tpu.vector_store %arg8[%c0_20, %c0_21, %c0_22], %35 {strides = array<i32>} : memref<1x32x256xf32, #tpu.memory_space<vmem>>, vector<1x32x256xf32>,
    return
  }
  func.func @transform_0(%arg0: i32) -> (i32, i32, i32) {
    %c0_i32 = arith.constant 0 : i32
    %c0_i32_0 = arith.constant 0 : i32
    %c0_i32_1 = arith.constant 0 : i32
    return %arg0, %c0_i32, %c0_i32_0 : i32, i32, i32
  }
  func.func @transform_1(%arg0: i32) -> (i32, i32) {
    %c0_i32 = arith.constant 0 : i32
    %c0_i32_0 = arith.constant 0 : i32
    %c0_i32_1 = arith.constant 0 : i32
    return %c0_i32, %c0_i32_0 : i32, i32
  }
  func.func @transform_2(%arg0: i32) -> (i32, i32) {
    %c0_i32 = arith.constant 0 : i32
    %c0_i32_0 = arith.constant 0 : i32
    %c0_i32_1 = arith.constant 0 : i32
    return %c0_i32, %c0_i32_0 : i32, i32
  }
  func.func @transform_3(%arg0: i32) -> (i32, i32) {
    %c0_i32 = arith.constant 0 : i32
    %c0_i32_0 = arith.constant 0 : i32
    %c0_i32_1 = arith.constant 0 : i32
    return %c0_i32, %c0_i32_0 : i32, i32
  }
  func.func @transform_4(%arg0: i32) -> (i32, i32) {
    %c0_i32 = arith.constant 0 : i32
    %c0_i32_0 = arith.constant 0 : i32
    %c0_i32_1 = arith.constant 0 : i32
    return %c0_i32, %c0_i32_0 : i32, i32
  }
  func.func @transform_5(%arg0: i32) -> (i32, i32) {
    %c0_i32 = arith.constant 0 : i32
    %c0_i32_0 = arith.constant 0 : i32
    %c0_i32_1 = arith.constant 0 : i32
    return %c0_i32, %c0_i32_0 : i32, i32
  }
  func.func @transform_6(%arg0: i32) -> (i32, i32) {
    %c0_i32 = arith.constant 0 : i32
    %c0_i32_0 = arith.constant 0 : i32
    %c0_i32_1 = arith.constant 0 : i32
    return %c0_i32, %c0_i32_0 : i32, i32
  }
  func.func @transform_7(%arg0: i32) -> (i32, i32, i32) {
    %c0_i32 = arith.constant 0 : i32
    %c0_i32_0 = arith.constant 0 : i32
    %c0_i32_1 = arith.constant 0 : i32
    return %arg0, %c0_i32, %c0_i32_0 : i32, i32, i32
  }
}

</mosaic_0001>

<bundles_post_ra>
// kernel: linear_self_attention.1
= control target key start
LH: loop header
LB: loop body
LE: loop exit
PB: predicated region body
PF: predicated region fallthrough
CT: control target
= control target key end

     0   :  { %s1296_s24 = smov 0   ;;  %s1584_s0 = inlined_call_operand.vmem [shape: f32[2,32,256], index: 0, kind: input, shape index: {}]   ;;  %s1585_s1 = inlined_call_operand.vmem [shape: f32[65,32], index: 1, kind: input, shape index: {}]   ;;  %s1586_s2 = inlined_call_operand.vmem [shape: f32[65,1], index: 2, kind: input, shape index: {}]   ;;  %s1587_s3 = inlined_call_operand.vmem [shape: f32[32,32], index: 3, kind: input, shape index: {}]   ;;  %s1588_s4 = inlined_call_operand.vmem [shape: f32[32,1], index: 4, kind: input, shape index: {}]   ;;  %s1589_s5 = inlined_call_operand.vmem [shape: f32[256,16], index: 5, kind: input, shape index: {}]   ;;  %s1590_s6 = inlined_call_operand.vmem [shape: f32[16,256], index: 6, kind: input, shape index: {}]   ;;  %s1591_s7 = inlined_call_operand.vmem [shape: f32[2,32,256], index: 7, kind: output, shape index: {}]  }
   0x1 LB: > { %s1035_s25 = sadd.s32 4294967295, %s1252_s24   ;;  %p1039_p0 = scmp.ge.s32.totalorder %s1252_s24, 1  ;;  %s1252_s24 = sphi %s1296_s24, %s17_s24  }
   0x2   : > { %p237_p1 = scmp.lt.s32.totalorder %s1252_s24, 3 }
   0x4   : > { %p238_p2 = pnand %p1039_p0, %p237_p1 }
   0x5   : > { %p269_p3 = scmp.lt.s32.totalorder (!%p238_p2), %s1035_s25, 1  ;;  %v1254_v0 = vmov (!%p238_p2), 0.0   ;;  %v1255_v1 = vmov (!%p238_p2), 0   ;;  %v296_v2 = vld [vmem:[%s1586_s2] sm:$0xff] (!%p238_p2)  ;;  %v297_v3 = vld [vmem:[%s1586_s2 + $0x8] sm:$0xff] (!%p238_p2)  ;;  %v298_v16 = vld [vmem:[%s1586_s2 + $0x10] sm:$0xff] (!%p238_p2) }
   0x6   : > { %241 = sbr.rel (%p238_p2) target bundleno = 1127 (0x467), region = 48  ;;  %442 = vmatprep.mubr.f32.mxu0 (!%p238_p2), %v1254_v0  ;;  %1239 = vset.pattern.permute.xlu1 (!%p238_p2), %v1255_v1  ;;  %v304_v4 = vld [vmem:[%s1586_s2 + $0x40] sm:$0x1] (!%p238_p2)  ;;  %v299_v18 = vld [vmem:[%s1586_s2 + $0x18] sm:$0xff] (!%p238_p2)  ;;  %vm350_vm0 = vcmask (!%p238_p2), 261120   ;;  %v288_v21 = vld [vmem:[%s1585_s1 + $0x8] sm:$0xff] (!%p238_p2) }
   0x7   : > { %1238 = vset.pattern.permute.xlu0 (!%p238_p2), %v1255_v1  ;;  %307 = vperm.xlu1 (!%p238_p2), %1239, %v296_v2   ;;  %v287_v19 = vld [vmem:[%s1585_s1] sm:$0xff] (!%p238_p2)  ;;  %v301_v22 = vld [vmem:[%s1586_s2 + $0x28] sm:$0xff] (!%p238_p2)  ;;  %v289_v23 = vld [vmem:[%s1585_s1 + $0x10] sm:$0xff] (!%p238_p2)  ;;  %vm497_vm1 = vcmask (!%p238_p2), 1040384   ;;  %vm725_vm2 = vcmask (!%p238_p2), 130048  }
   0x8   : > { %347 = vperm.xlu0 (!%p238_p2), %1238, %v304_v4   ;;  %v300_v20 = vld [vmem:[%s1586_s2 + $0x20] sm:$0xff] (!%p238_p2)  ;;  %v302_v24 = vld [vmem:[%s1586_s2 + $0x30] sm:$0xff] (!%p238_p2)  ;;  %v290_v25 = vld [vmem:[%s1585_s1 + $0x18] sm:$0xff] (!%p238_p2) }
   0x9   : > { %v303_v26 = vld [vmem:[%s1586_s2 + $0x38] sm:$0xff] (!%p238_p2)  ;;  %v291_v27 = vld [vmem:[%s1585_s1 + $0x20] sm:$0xff] (!%p238_p2)  ;;  %v292_v28 = vld [vmem:[%s1585_s1 + $0x28] sm:$0xff] (!%p238_p2) }
   0xa   : > { %v293_v29 = vld [vmem:[%s1585_s1 + $0x30] sm:$0xff] (!%p238_p2)  ;;  %v294_v30 = vld [vmem:[%s1585_s1 + $0x38] sm:$0xff] (!%p238_p2)  ;;  %v295_v31 = vld [vmem:[%s1585_s1 + $0x40] sm:$0x1] (!%p238_p2) }
   0xb   : > { %312 = vperm.xlu1 (!%p238_p2), %1239, %v297_v3   ;;  %v847_v32 = vld [vmem:[%s1588_s4] sm:$0xff] (!%p238_p2)  ;;  %v849_v33 = vld [vmem:[%s1588_s4 + $0x10] sm:$0xff] (!%p238_p2)  ;;  %v526_v35 = vld [vmem:[%s1589_s5 + $0x88] sm:$0xff] (!%p238_p2) }
   0xc   : > { %v525_v34 = vld [vmem:[%s1589_s5 + $0x80] sm:$0xff] (!%p238_p2)  ;;  %v510_v38 = vld [vmem:[%s1589_s5 + $0x8] sm:$0xff] (!%p238_p2)  ;;  %v527_v39 = vld [vmem:[%s1589_s5 + $0x90] sm:$0xff] (!%p238_p2) }
   0xd   : > { %s1593_s25 = smov (!%p269_p3, %s1035_s25), 1  ;;  %v509_v36 = vld [vmem:[%s1589_s5] sm:$0xff]  ;;  %v1152_v37 = vpack.c.bf16 %v526_v35, %v525_v34  ;;  %v528_v40 = vld [vmem:[%s1589_s5 + $0x98] sm:$0xff]  ;;  %v511_v43 = vld [vmem:[%s1589_s5 + $0x10] sm:$0xff] }
   0xe   : > { %s1063_s28 = sshll.u32 %s1593_s25, 6  ;;  %v1154_v41 = vpack.c.bf16 %v510_v38, %v509_v36  ;;  %v1156_v42 = vpack.c.bf16 %v528_v40, %v527_v39  ;;  %v512_v44 = vld [vmem:[%s1589_s5 + $0x18] sm:$0xff]  ;;  %v529_v45 = vld [vmem:[%s1589_s5 + $0xa0] sm:$0xff]  ;;  %v530_v46 = vld [vmem:[%s1589_s5 + $0xa8] sm:$0xff] }
   0xf   : > { %s273_s8 = scalar_lea.vmem %s1584_s0, %s1063_s28  ;;  %317 = vperm.xlu1 %1239, %v298_v16   ;;  %1153 = vmatprep.subr.bf16.mxu1 %v1152_v37  ;;  %v1158_v47 = vpack.c.bf16 %v512_v44, %v511_v43  ;;  %v850_v48 = vld [vmem:[%s1588_s4 + $0x18] sm:$0xff]  ;;  %v1160_v49 = vpack.c.bf16 %v530_v46, %v529_v45  ;;  %v513_v50 = vld [vmem:[%s1589_s5 + $0x20] sm:$0xff]  ;;  %v514_v51 = vld [vmem:[%s1589_s5 + $0x28] sm:$0xff]  ;;  %s278_s13 = scalar_lea.vmem %s1591_s7, %s1063_s28 }
  0x10   : > { %v280_v5 = vld [vmem:[%s273_s8 + $0x8] sm:$0xff]  ;;  %v282_v6 = vld [vmem:[%s273_s8 + $0x18] sm:$0xff]  ;;  %v279_v7 = vld [vmem:[%s273_s8] sm:$0xff]  ;;  %1155 = vmatpush3.bf16.msra.mxu1 %v1154_v41  ;;  %v1162_v54 = vpack.c.bf16 %v514_v51, %v513_v50  ;;  %v545_v50 = vlaneseq }
  0x11   : > { %v1144_v8 = vpack.c.bf16 %v282_v6, %v280_v5  ;;  %v281_v9 = vld [vmem:[%s273_s8 + $0x10] sm:$0xff]  ;;  %v284_v10 = vld [vmem:[%s273_s8 + $0x28] sm:$0xff]  ;;  %v286_v11 = vld [vmem:[%s273_s8 + $0x38] sm:$0xff]  ;;  %1157 = vmatprep.subr.bf16.mxu1 %v1156_v42 }
  0x12   : > { %v1146_v12 = vpack.c.bf16 %v281_v9, %v279_v7  ;;  %v1148_v13 = vpack.c.bf16 %v286_v11, %v284_v10  ;;  %v283_v14 = vld [vmem:[%s273_s8 + $0x20] sm:$0xff]  ;;  %v285_v15 = vld [vmem:[%s273_s8 + $0x30] sm:$0xff]  ;;  %v532_v53 = vld [vmem:[%s1589_s5 + $0xb8] sm:$0xff] }
  0x13   : > { %1145 = vmatprep.subr.bf16.mxu0 %v1144_v8  ;;  %v1150_v17 = vpack.c.bf16 %v285_v15, %v283_v14  ;;  %322 = vperm.xlu1 %1239, %v299_v18   ;;  %v531_v52 = vld [vmem:[%s1589_s5 + $0xb0] sm:$0xff]  ;;  %v516_v57 = vld [vmem:[%s1589_s5 + $0x38] sm:$0xff]  ;;  %v538_v34 = vld [vmem:[%s1589_s5 + $0xe8] sm:$0xff] }
  0x14   : > { %1147 = vmatpush1.bf16.msra.mxu0 %v1146_v12  ;;  %1159 = vmatpush3.bf16.msra.mxu1 %v1158_v47  ;;  %v1164_v55 = vpack.c.bf16 %v532_v53, %v531_v52  ;;  %v515_v56 = vld [vmem:[%s1589_s5 + $0x30] sm:$0xff]  ;;  %v521_v36 = vld [vmem:[%s1589_s5 + $0x60] sm:$0xff]  ;;  %v540_v40 = vld [vmem:[%s1589_s5 + $0xf8] sm:$0xff]  ;;  %v546_v52 = vshrl.u32 %v545_v50, 7 }
  0x15   : > { %1149 = vmatprep.subr.bf16.mxu0 %v1148_v13  ;;  %1161 = vmatprep.subr.bf16.mxu1 %v1160_v49  ;;  %v1166_v58 = vpack.c.bf16 %v516_v57, %v515_v56  ;;  %v539_v38 = vld [vmem:[%s1589_s5 + $0xf0] sm:$0xff] }
  0x16   : > { %v1180_v43 = vpack.c.bf16 %v540_v40, %v539_v38 }
  0x17   : > { %327 = vperm.xlu1 %1239, %v300_v20   ;;  %v533_v20 = vld [vmem:[%s1589_s5 + $0xc0] sm:$0xff] }
  0x18   : > { %1151 = vmatpush1.bf16.msra.mxu0 %v1150_v17  ;;  %1163 = vmatpush3.bf16.msra.mxu1 %v1162_v54 }
  0x19   : > { %1185 = vmatprep.subr.bf16.mxu0 %v1152_v37  ;;  %1165 = vmatprep.subr.bf16.mxu1 %v1164_v55  ;;  %v522_v37 = vld [vmem:[%s1589_s5 + $0x68] sm:$0xff] }
  0x1a   : > { %v1178_v39 = vpack.c.bf16 %v522_v37, %v521_v36 }
  0x1b   : > { %1044 = vmatmul.mubr.msk.f32.vlgmr.msra.gmra.mrb[0].mxu0 %vm350_vm0, %v287_v19  ;;  %332 = vperm.xlu1 %1239, %v301_v22  }
  0x1c   : > { %448 = vmatprep.mubr.f32.mxu0 %v1254_v0  ;;  %1187 = vmatpush3.bf16.msra.mxu0 %v1154_v41  ;;  %v523_v41 = vld [vmem:[%s1589_s5 + $0x70] sm:$0xff] }
  0x1d   : > { %1189 = vmatprep.subr.bf16.mxu0 %v1156_v42  ;;  %1167 = vmatpush3.bf16.msra.mxu1 %v1166_v58  ;;  %v524_v42 = vld [vmem:[%s1589_s5 + $0x78] sm:$0xff] }
  0x1e   : > { %v1182_v44 = vpack.c.bf16 %v524_v42, %v523_v41 }
  0x1f   : > { %1045 = vmatmul.mubr.msk.f32.gmra.mrb[2].mxu0 %vm350_vm0, %v288_v21  ;;  %337 = vperm.xlu1 %1239, %v302_v24   ;;  %v534_v21 = vld [vmem:[%s1589_s5 + $0xc8] sm:$0xff] }
  0x20   : > { %454 = vmatprep.mubr.f32.mxu0 %v1254_v0  ;;  %1191 = vmatpush3.bf16.msra.mxu0 %v1158_v47  ;;  %v1168_v22 = vpack.c.bf16 %v534_v21, %v533_v20  ;;  %v518_v24 = vld [vmem:[%s1589_s5 + $0x48] sm:$0xff] }
  0x21   : > { %1193 = vmatprep.subr.bf16.mxu0 %v1160_v49 }
  0x22   : > { %1169 = vmatprep.subr.bf16.mxu1 %v1168_v22 }
  0x23   : > { %1046 = vmatmul.mubr.msk.f32.gmra.mrb[4].mxu0 %vm350_vm0, %v289_v23  ;;  %342 = vperm.xlu1 %1239, %v303_v26   ;;  %v517_v23 = vld [vmem:[%s1589_s5 + $0x40] sm:$0xff]  ;;  %v535_v26 = vld [vmem:[%s1589_s5 + $0xd0] sm:$0xff] }
  0x24   : > { %460 = vmatprep.mubr.f32.mxu0 %v1254_v0  ;;  %1195 = vmatpush3.bf16.msra.mxu0 %v1162_v54  ;;  %v547_v54 = vsub.s32 0, %v546_v52 }
  0x25   : > { %1197 = vmatprep.subr.bf16.mxu0 %v1164_v55 }
  0x27   : > { %1047 = vmatmul.mubr.msk.f32.gmra.mrb[6].mxu0 %vm350_vm0, %v290_v25  ;;  %853 = vperm.xlu1 %1239, %v847_v32   ;;  %v1170_v25 = vpack.c.bf16 %v518_v24, %v517_v23  ;;  %v848_v32 = vld [vmem:[%s1588_s4 + $0x8] sm:$0xff] }
  0x28   : > { %466 = vmatprep.mubr.f32.mxu0 %v1254_v0  ;;  %1199 = vmatpush3.bf16.msra.mxu0 %v1166_v58 }
  0x29   : > { %1201 = vmatprep.subr.bf16.mxu0 %v1168_v22  ;;  %1171 = vmatpush3.bf16.msra.mxu1 %v1170_v25 }
  0x2b   : > { %1048 = vmatmul.mubr.msk.f32.gmra.mrb[8].mxu0 %vm350_vm0, %v291_v27  ;;  %863 = vperm.xlu1 %1239, %v849_v33   ;;  %v536_v27 = vld [vmem:[%s1589_s5 + $0xd8] sm:$0xff]  ;;  %v537_v33 = vld [vmem:[%s1589_s5 + $0xe0] sm:$0xff] }
  0x2c   : > { %472 = vmatprep.mubr.f32.mxu0 %v1254_v0  ;;  %1203 = vmatpush3.bf16.msra.mxu0 %v1170_v25  ;;  %v1176_v35 = vpack.c.bf16 %v538_v34, %v537_v33 }
  0x2f   : > { %1049 = vmatmul.mubr.msk.f32.gmra.mrb[10].mxu0 %vm350_vm0, %v292_v28  ;;  %868 = vperm.xlu1 %1239, %v850_v48   ;;  %v1172_v28 = vpack.c.bf16 %v536_v27, %v535_v26  ;;  %v541_v26 = vld [vmem:[%s1590_s6] sm:$0xff] }
  0x30   : > { %478 = vmatprep.mubr.f32.mxu0 %v1254_v0 }
  0x31   : > { %1205 = vmatprep.subr.bf16.mxu0 %v1172_v28  ;;  %1173 = vmatprep.subr.bf16.mxu1 %v1172_v28 }
  0x33   : > { %1050 = vmatmul.mubr.msk.f32.gmra.mrb[12].mxu0 %vm350_vm0, %v293_v29  ;;  %v519_v29 = vld [vmem:[%s1589_s5 + $0x50] sm:$0xff] }
  0x34   : > { %484 = vmatprep.mubr.f32.mxu0 %v1254_v0 }
  0x37   : > { %1051 = vmatmul.mubr.msk.f32.gmra.mrb[14].mxu0 %vm350_vm0, %v294_v30  ;;  %v520_v30 = vld [vmem:[%s1589_s5 + $0x58] sm:$0xff] }
  0x38   : > { %490 = vmatprep.mubr.f32.mxu0 %v1254_v0 }
  0x3b   : > { %1052 = vmatmul.mubr.msk.f32.gmra.mrb[16].mxu0 %vm350_vm0, %v295_v31  ;;  %v1174_v31 = vpack.c.bf16 %v520_v30, %v519_v29 }
  0x3d   : > { %1207 = vmatpush3.bf16.msra.mxu0 %v1174_v31  ;;  %1175 = vmatpush3.bf16.msra.mxu1 %v1174_v31 }
  0x3e   : > { %1209 = vmatprep.subr.bf16.mxu0 %v1176_v35  ;;  %1177 = vmatprep.subr.bf16.mxu1 %v1176_v35 }
  0x41   : > { %1211 = vmatpush3.bf16.msra.mxu0 %v1178_v39  ;;  %1179 = vmatpush3.bf16.msra.mxu1 %v1178_v39 }
  0x42   : > { %1213 = vmatprep.subr.bf16.mxu0 %v1180_v43  ;;  %1181 = vmatprep.subr.bf16.mxu1 %v1180_v43 }
  0x45   : > { %1215 = vmatpush3.bf16.msra.mxu0 %v1182_v44  ;;  %1183 = vmatpush3.bf16.msra.mxu1 %v1182_v44 }
  0x86   : > { %v308_v51 = vpop.permute.xlu1 %307 }
  0x87   : > { %v348_v12 = vpop.permute.xlu0 %347 }
  0x8a   : > { %v313_v53 = vpop.permute.xlu1 %312 }
  0xee   : > { %v1441_v59 = vpop.f32.mrb[0].mxu0 }
  0xef   : > { %v1443_v60 = vpop.f32.mrb[1].mxu0  ;;  %v445_v57 = vadd.f32 %v1441_v59, %v308_v51 }
  0xf2   : > { %v1445_v61 = vpop.f32.mrb[2].mxu0 }
  0xf3   : > { %v1447_v62 = vpop.f32.mrb[3].mxu0 }
  0xf6   : > { %v1449_v63 = vpop.f32.mrb[4].mxu0 }
  0xf7   : > { %v1451_v1 = vpop.f32.mrb[5].mxu0 }
  0xfa   : > { %v1453_v2 = vpop.f32.mrb[6].mxu0 }
  0xfb   : > { %v1455_v3 = vpop.f32.mrb[7].mxu0 }
  0xfe   : > { %v1457_v4 = vpop.f32.mrb[8].mxu0 }
  0xff   : > { %v1459_v5 = vpop.f32.mrb[9].mxu0 }
 0x102   : > { %v1461_v6 = vpop.f32.mrb[10].mxu0 }
 0x103   : > { %v1463_v7 = vpop.f32.mrb[11].mxu0 }
 0x106   : > { %v1465_v8 = vpop.f32.mrb[12].mxu0 }
 0x107   : > { %v1467_v9 = vpop.f32.mrb[13].mxu0 }
 0x10a   : > { %v1469_v10 = vpop.f32.mrb[14].mxu0 }
 0x10b   : > { %v1471_v11 = vpop.f32.mrb[15].mxu0 }
 0x10e   : > { %v492_v13 = vpop.f32.mrb[16].mxu0 }
 0x10f   : > { %v493_v14 = vadd.f32 %v492_v13, %v348_v12  ;;  %v494_v15 = vpop.f32.mrb[17].mxu0 }
 0x110   : > { %v495_v16 = vadd.f32 %v494_v15, %v348_v12  ;;  %v447_v12 = vadd.f32 %v1443_v60, %v308_v51 }
 0x111   : > { %v498_v17 = vsel %vm497_vm1, %v493_v14, -inf }
 0x112   : > { %v499_v18 = vsel %vm497_vm1, %v495_v16, -inf }
 0x113   : > { %v500_v19 = vmax.f32 %v498_v17, %v499_v18 }
 0x115   : > { %501 = vmax.xlane.f32.xlu0 %v500_v19  ;;  %v451_v19 = vadd.f32 %v1445_v61, %v313_v53 }
 0x12b   : > { %858 = vperm.xlu0 %1238, %v848_v32  }
 0x1a2   : > { %v502_v45 = vpop.xlane.xlu0 %501 }
 0x1a3   : > { %v503_v46 = vsub.f32 %v493_v14, %v502_v45  ;;  %v504_v47 = vsub.f32 %v495_v16, %v502_v45  ;;  %v318_v14 = vpop.permute.xlu1 %317  ;;  %v453_v16 = vadd.f32 %v1447_v62, %v313_v53 }
 0x1a4   : > { %v459_v59 = vadd.f32 %v1451_v1, %v318_v14  ;;  %v457_v22 = vadd.f32 %v1449_v63, %v318_v14  ;;  %v542_v1 = vld [vmem:[%s1590_s6 + $0x8] sm:$0xff]  ;;  %v544_v63 = vld [vmem:[%s1590_s6 + $0x18] sm:$0xff] }
 0x1a5   : > { %v505_v48 = vmul.f32 1.442695, %v503_v46  ;;  %v507_v49 = vmul.f32 1.442695, %v504_v47 }
 0x1a7   : > { %1240 = vpow2.f32 %v505_v48  ;;  %v323_v20 = vpop.permute.xlu1 %322 }
 0x1a8   : > { %1242 = vpow2.f32 %v507_v49  ;;  %v465_v23 = vadd.f32 %v1455_v3, %v323_v20  ;;  %v463_v25 = vadd.f32 %v1453_v2, %v323_v20  ;;  %v1216_v3 = vpack.c.bf16 %v544_v63, %v542_v1  ;;  %v543_v2 = vld [vmem:[%s1590_s6 + $0x10] sm:$0xff] }
 0x1a9   : > { %v1218_v27 = vpack.c.bf16 %v543_v2, %v541_v26 }
 0x1aa   : > { %1217 = vmatprep.subr.bf16.mxu0 %v1216_v3 }
 0x1ab   : > { %v328_v49 = vpop.permute.xlu1 %327 }
 0x1ac   : > { %v469_v51 = vadd.f32 %v1457_v4, %v328_v49  ;;  %v471_v52 = vadd.f32 %v1459_v5, %v328_v49 }
 0x1af   : > { %v333_v50 = vpop.permute.xlu1 %332 }
 0x1b1   : > { %v1241_v55 = vpop.eup %1240 }
 0x1b2   : > { %v1243_v56 = vpop.eup %1242  ;;  %v548_v58 = vrot.slane %v1241_v55, %v547_v54 }
 0x1b3   : > { %710 = vmatprep.mubr.f32.mxu0 %v1243_v56  ;;  %v552_v13 = vrot.slane %v1243_v56, %v547_v54  ;;  %v338_v53 = vpop.permute.xlu1 %337  ;;  %v828_v56 = vmax.f32 %v471_v52, 0.0 }
 0x1b4   : > { %711 = vmatmul.mubr.f32.vlgmr.msra.gmra.mrb[18].mxu0 %v1241_v55  ;;  %v553_v15 = vmul.f32 %v548_v58, %v445_v57  ;;  %v555_v60 = vmul.f32 %v548_v58, %v451_v19  ;;  %v557_v62 = vmul.f32 %v548_v58, %v457_v22  ;;  %v559_v61 = vmul.f32 %v548_v58, %v463_v25 }
 0x1b5   : > { %v554_v17 = vmul.f32 %v552_v13, %v447_v12  ;;  %802 = vmatprep.mubr.f32.mxu0 %v1254_v0  ;;  %v556_v18 = vmul.f32 %v552_v13, %v453_v16  ;;  %v558_v21 = vmul.f32 %v552_v13, %v459_v59  ;;  %v560_v24 = vmul.f32 %v552_v13, %v465_v23 }
 0x1b6   : > { %1219 = vmatpush1.bf16.msra.mxu0 %v1218_v27  ;;  %v475_v55 = vadd.f32 %v1461_v6, %v333_v50  ;;  %v477_v57 = vadd.f32 %v1463_v7, %v333_v50  ;;  %v481_v16 = vadd.f32 %v1465_v8, %v338_v53  ;;  %v844_v27 = vld [vmem:[%s1587_s3 + $0x8] sm:$0xff] }
 0x1b7   : > { %625 = vmatprep.mubr.f32.mxu1 %v554_v17  ;;  %v343_v4 = vpop.permute.xlu1 %342 }
 0x1b8   : > { %626 = vmatmul.mubr.f32.vlgmr.msra.gmra.mrb[0].mxu1 %v553_v15  ;;  %v829_v15 = vmax.f32 %v475_v55, 0.0  ;;  %v830_v17 = vmax.f32 %v477_v57, 0.0  ;;  %v487_v6 = vadd.f32 %v1469_v10, %v343_v4  ;;  %v489_v22 = vadd.f32 %v1471_v11, %v343_v4  ;;  %v843_v11 = vld [vmem:[%s1587_s3] sm:$0xff] }
 0x1b9   : > { %630 = vmatprep.mubr.f32.mxu1 %v556_v18  ;;  %v483_v18 = vadd.f32 %v1467_v9, %v338_v53 }
 0x1ba   : > { %v834_v9 = vmax.f32 %v489_v22, 0.0 }
 0x1bb   : > { %v832_v7 = vmax.f32 %v483_v18, 0.0 }
 0x1bc   : > { %631 = vmatmul.mubr.f32.gmra.mrb[2].mxu1 %v555_v60  ;;  %v831_v60 = vmax.f32 %v481_v16, 0.0 }
 0x1bd   : > { %635 = vmatprep.mubr.f32.mxu1 %v558_v21 }
 0x1c0   : > { %636 = vmatmul.mubr.f32.gmra.mrb[4].mxu1 %v557_v62 }
 0x1c1   : > { %640 = vmatprep.mubr.f32.mxu1 %v560_v24 }
 0x1c4   : > { %641 = vmatmul.mubr.f32.gmra.mrb[6].mxu1 %v559_v61  ;;  %v833_v61 = vmax.f32 %v487_v6, 0.0 }
 0x1c5   : > { %947 = vmatprep.mubr.f32.mxu1 %v1254_v0 }
 0x287   : > { %v1141_v28 = vpop.f32.mrb[18].mxu0 }
 0x288   : > { %v1142_v29 = vpop.f32.mrb[19].mxu0 }
 0x289   : > { %v1143_v30 = vadd.f32 %v1142_v29, %v1141_v28  ;;  %v845_v28 = vld [vmem:[%s1587_s3 + $0x10] sm:$0xff]  ;;  %v846_v29 = vld [vmem:[%s1587_s3 + $0x18] sm:$0xff] }
 0x28b   : > { %1244 = vrcp.f32 %v1143_v30  ;;  %v1097_v31 = vpop.f32.mrb[0].mxu1  ;;  %v854_v30 = vpop.permute.xlu1 %853 }
 0x28c   : > { %v1098_v32 = vpop.f32.mrb[1].mxu1 }
 0x28d   : > { %v1099_v33 = vadd.f32 %v1098_v32, %v1097_v31 }
 0x28f   : > { %v1100_v34 = vpop.f32.mrb[2].mxu1 }
 0x290   : > { %v1101_v35 = vpop.f32.mrb[3].mxu1 }
 0x291   : > { %v1102_v36 = vadd.f32 %v1101_v35, %v1100_v34  ;;  %v859_v35 = vpop.permute.xlu0 %858 }
 0x293   : > { %v1103_v37 = vpop.f32.mrb[4].mxu1 }
 0x294   : > { %v1104_v38 = vpop.f32.mrb[5].mxu1 }
 0x295   : > { %v1245_v39 = vpop.eup %1244  ;;  %v1105_v40 = vadd.f32 %v1104_v38, %v1103_v37  ;;  %v864_v38 = vpop.permute.xlu1 %863 }
 0x296   : > { %v720_v41 = vrot.slane %v1245_v39, %v547_v54  ;;  %v827_v54 = vmax.f32 %v469_v51, 0.0 }
 0x297   : > { %v1106_v42 = vpop.f32.mrb[6].mxu1 }
 0x298   : > { %v721_v43 = vmul.f32 %v1099_v33, %v720_v41  ;;  %v722_v44 = vmul.f32 %v1102_v36, %v720_v41  ;;  %v723_v45 = vmul.f32 %v1105_v40, %v720_v41  ;;  %v1107_v46 = vpop.f32.mrb[7].mxu1 }
 0x299   : > { %v1108_v47 = vadd.f32 %v1107_v46, %v1106_v42 }
 0x29a   : > { %1053 = vmatmul.mubr.msk.f32.vlgmr.msra.gmra.mrb[20].mxu0 %vm725_vm2, %v721_v43 }
 0x29b   : > { %v724_v48 = vmul.f32 %v1108_v47, %v720_v41  ;;  %808 = vmatprep.mubr.f32.mxu0 %v1254_v0 }
 0x29e   : > { %1054 = vmatmul.mubr.msk.f32.gmra.mrb[22].mxu0 %vm725_vm2, %v722_v44  ;;  %v869_v44 = vpop.permute.xlu1 %868 }
 0x29f   : > { %814 = vmatprep.mubr.f32.mxu0 %v1254_v0 }
 0x2a2   : > { %1055 = vmatmul.mubr.msk.f32.gmra.mrb[24].mxu0 %vm725_vm2, %v723_v45 }
 0x2a3   : > { %820 = vmatprep.mubr.f32.mxu0 %v1254_v0 }
 0x2a6   : > { %1056 = vmatmul.mubr.msk.f32.gmra.mrb[26].mxu0 %vm725_vm2, %v724_v48 }
 0x36d   : > { %v804_v58 = vpop.f32.mrb[20].mxu0 }
 0x36e   : > { %v835_v12 = vmul.f32 %v827_v54, %v804_v58  ;;  %v806_v13 = vpop.f32.mrb[21].mxu0 }
 0x36f   : > { %v836_v14 = vmul.f32 %v828_v56, %v806_v13 }
 0x371   : > { %v810_v19 = vpop.f32.mrb[22].mxu0 }
 0x372   : > { %v837_v5 = vmul.f32 %v829_v15, %v810_v19  ;;  %v812_v59 = vpop.f32.mrb[23].mxu0 }
 0x373   : > { %v838_v20 = vmul.f32 %v830_v17, %v812_v59 }
 0x374   : > { %v1222_v21 = vpack.c.bf16 %v837_v5, %v835_v12 }
 0x375   : > { %v1220_v23 = vpack.c.bf16 %v838_v20, %v836_v14  ;;  %v816_v62 = vpop.f32.mrb[24].mxu0 }
 0x376   : > { %v839_v24 = vmul.f32 %v831_v60, %v816_v62  ;;  %v818_v25 = vpop.f32.mrb[25].mxu0 }
 0x377   : > { %v840_v8 = vmul.f32 %v832_v7, %v818_v25  ;;  %1221 = vmatprep.subr.bf16.mxu1 %v1220_v23 }
 0x378   : > { %1223 = vmatpush1.bf16.msra.mxu1 %v1222_v21 }
 0x379   : > { %v822_v1 = vpop.f32.mrb[26].mxu0 }
 0x37a   : > { %v841_v63 = vmul.f32 %v833_v61, %v822_v1  ;;  %v824_v3 = vpop.f32.mrb[27].mxu0 }
 0x37b   : > { %v842_v26 = vmul.f32 %v834_v9, %v824_v3 }
 0x37c   : > { %v1226_v2 = vpack.c.bf16 %v841_v63, %v839_v24 }
 0x37d   : > { %v1224_v10 = vpack.c.bf16 %v842_v26, %v840_v8 }
 0x37f   : > { %1225 = vmatprep.subr.bf16.mxu1 %v1224_v10 }
 0x380   : > { %1227 = vmatpush1.bf16.msra.mxu1 %v1226_v2 }
 0x383   : > { %1057 = vmatmul.mubr.msk.f32.vlgmr.msra.gmra.mrb[8].mxu1 %vm350_vm0, %v843_v11 }
 0x384   : > { %953 = vmatprep.mubr.f32.mxu1 %v1254_v0 }
 0x387   : > { %1058 = vmatmul.mubr.msk.f32.gmra.mrb[10].mxu1 %vm350_vm0, %v844_v27 }
 0x388   : > { %959 = vmatprep.mubr.f32.mxu1 %v1254_v0 }
 0x38b   : > { %1059 = vmatmul.mubr.msk.f32.gmra.mrb[12].mxu1 %vm350_vm0, %v845_v28 }
 0x38c   : > { %965 = vmatprep.mubr.f32.mxu1 %v1254_v0 }
 0x38f   : > { %1060 = vmatmul.mubr.msk.f32.gmra.mrb[14].mxu1 %vm350_vm0, %v846_v29 }
 0x456   : > { %v949_v31 = vpop.f32.mrb[8].mxu1 }
 0x457   : > { %v950_v32 = vadd.f32 %v949_v31, %v854_v30  ;;  %v951_v33 = vpop.f32.mrb[9].mxu1 }
 0x458   : > { %v952_v34 = vadd.f32 %v951_v33, %v854_v30 }
 0x459   : > { %972 = vst [vmem:[%s278_s13] sm:$0xff] %v950_v32 }
 0x45a   : > { %973 = vst [vmem:[%s278_s13 + $0x8] sm:$0xff] %v952_v34  ;;  %v955_v0 = vpop.f32.mrb[10].mxu1 }
 0x45b   : > { %v956_v36 = vadd.f32 %v955_v0, %v859_v35  ;;  %v957_v37 = vpop.f32.mrb[11].mxu1 }
 0x45c   : > { %v958_v39 = vadd.f32 %v957_v37, %v859_v35 }
 0x45d   : > { %974 = vst [vmem:[%s278_s13 + $0x10] sm:$0xff] %v956_v36 }
 0x45e   : > { %975 = vst [vmem:[%s278_s13 + $0x18] sm:$0xff] %v958_v39  ;;  %v961_v40 = vpop.f32.mrb[12].mxu1 }
 0x45f   : > { %v962_v41 = vadd.f32 %v961_v40, %v864_v38  ;;  %v963_v42 = vpop.f32.mrb[13].mxu1 }
 0x460   : > { %v964_v43 = vadd.f32 %v963_v42, %v864_v38 }
 0x461   : > { %976 = vst [vmem:[%s278_s13 + $0x20] sm:$0xff] %v962_v41 }
 0x462   : > { %977 = vst [vmem:[%s278_s13 + $0x28] sm:$0xff] %v964_v43  ;;  %v967_v45 = vpop.f32.mrb[14].mxu1 }
 0x463   : > { %v968_v46 = vadd.f32 %v967_v45, %v869_v44  ;;  %v969_v47 = vpop.f32.mrb[15].mxu1 }
 0x464   : > { %v970_v48 = vadd.f32 %v969_v47, %v869_v44 }
 0x465   : > { %978 = vst [vmem:[%s278_s13 + $0x30] sm:$0xff] %v968_v46 }
 0x466   : > { %979 = vst [vmem:[%s278_s13 + $0x38] sm:$0xff] %v970_v48 }
 0x467 PF: > { %s17_s24 = sadd.s32 1, %s1252_s24  }
 0x468   : > { %p14_p4 = scmp.ge.s32.totalorder %s17_s24, 4  }
 0x46a   :  { %16 = sbr.rel (!%p14_p4) target bundleno = 1 (0x1), region = 78 }

</bundles_post_ra>
